<compile_context>
chip_gen: v7x
topology: tpu7x:2x2x1
jax: 0.10.0
libtpu: 0.0.40
codegen_flags: <defaults>
</compile_context>

<pallas_src>
import jax
import jax.numpy as jnp
from jax.experimental import pallas as pl
from jax.experimental.pallas import tpu as pltpu


# ----------------------------- Pallas kernel -----------------------------
def patch_merging_kernel(w_ref, x_ref, o_ref):
    """One lane tile of the fused conv-as-GEMM per grid step.

    w_ref: (2C, 4C)  packed conv taps, constant index_map (VMEM-resident)
    x_ref: (4C, TN)  space-to-depth input columns for this lane tile
    o_ref: (2C, TN)  conv output columns for this lane tile
    """
    o_ref[...] = jnp.dot(
        w_ref[...], x_ref[...], preferred_element_type=jnp.float32
    ).astype(o_ref.dtype)


# ----------------------------- host-side prep (done ONCE) -----------------------------
def pack_weights(conv_w):
    """Conv2d(dim, 2*dim, 2, 2) OIHW weight -> (2C, 4C) GEMM weight.

    Last-axis flattening order is (ic, kh, kw) -> ic*4 + kh*2 + kw, which must
    (and does) match the space-to-depth packing of x in the forward wrapper.
    """
    OC, C, KH, KW = conv_w.shape
    assert (KH, KW) == (2, 2)
    return conv_w.reshape(OC, 4 * C)


# ----------------------------- forward wrapper -----------------------------
def patch_merging_forward(x, w_flat, H, W, *, use_bf16=False, max_tn=512):
    B, L, C = x.shape
    assert L == H * W, "input feature has wrong size"
    assert H % 2 == 0 and W % 2 == 0
    OC = w_flat.shape[0]
    OH, OW = H // 2, W // 2
    P = OH * OW
    N = B * P

    # torch: x.reshape(B, C, H, W) — raw row-major reinterpretation (NOT a permute);
    # this matches the reference module bit-exactly even though it is semantically odd.
    x_chw = x.reshape(B, C, H, W)

    # Space-to-depth: fold the 2x2 taps into the channel axis, fuse (B, OH, OW)
    # into one lane-dense column axis.  x_packed[ic*4+kh*2+kw, b*P+oh*OW+ow]
    #   = x[b, ic, 2*oh+kh, 2*ow+kw]
    x_s2d = x_chw.reshape(B, C, OH, 2, OW, 2).transpose(1, 3, 5, 0, 2, 4)
    x_packed = x_s2d.reshape(4 * C, N)

    in_dtype = jnp.bfloat16 if use_bf16 else x.dtype
    x_packed = x_packed.astype(in_dtype)
    w_in = w_flat.astype(in_dtype)

    # Lane tiling of the N axis: pad up to a multiple of 128 (no-op at the demo
    # shape), then pick the largest tile in {128, 256, 512} (capped by max_tn)
    # that divides the padded extent -> unmasked, lane-dense stores.
    N_pad = ((N + 127) // 128) * 128
    if N_pad != N:
        x_packed = jnp.pad(x_packed, ((0, 0), (0, N_pad - N)))
    tn = max(t for t in (128, 256, 512) if t <= max_tn and N_pad % t == 0)

    out = pl.pallas_call(
        patch_merging_kernel,
        out_shape=jax.ShapeDtypeStruct((OC, N_pad), x.dtype),
        grid=(N_pad // tn,),
        in_specs=[
            pl.BlockSpec((OC, 4 * C), lambda n: (0, 0)),   # weights resident in VMEM
            pl.BlockSpec((4 * C, tn), lambda n: (0, n)),   # input lane tile
        ],
        out_specs=pl.BlockSpec((OC, tn), lambda n: (0, n)),
        compiler_params=pltpu.CompilerParams(
            dimension_semantics=("parallel",)),            # lane-tile axis -> both v7x TCs
    )(w_in, x_packed)

    out = out[:, :N]                                       # drop lane padding (no-op here)
    out_bcp = out.reshape(OC, B, P).transpose(1, 0, 2)     # (B, 2C, P) == NCHW, spatial flat
    # torch: conv_out.view(B, -1, 2*C) — raw row-major view of (B, 2C, OH, OW).
    return out_bcp.reshape(B, -1, OC)


# ----------------------------- pure-JAX reference (sanity check) -----------------------------
def reference_forward(x, conv_w, H, W):
    B, L, C = x.shape
    xr = x.reshape(B, C, H, W)
    out = jax.lax.conv_general_dilated(
        xr, conv_w, window_strides=(2, 2), padding="VALID",
        dimension_numbers=("NCHW", "OIHW", "NCHW"),
        precision=jax.lax.Precision.HIGHEST)
    return out.reshape(B, -1, 2 * C)


# ----------------------------- main -----------------------------
if __name__ == "__main__":
    B, DIM, H, W = 2, 64, 16, 32        # small, lane-friendly demo shapes
    key = jax.random.PRNGKey(0)
    kx, kw = jax.random.split(key)
    x = jax.random.normal(kx, (B, H * W, DIM), dtype=jnp.float32)
    conv_w = (jax.random.normal(kw, (2 * DIM, DIM, 2, 2), dtype=jnp.float32)
              / jnp.sqrt(4.0 * DIM))    # Conv2d(dim, 2*dim, 2, 2, bias=False) weight (OIHW)

    w_flat = pack_weights(conv_w)       # host-side, done once

    out = patch_merging_forward(x, w_flat, H, W)
    out = jax.block_until_ready(out)
    assert out.shape == (B, (H * W) // 4, 2 * DIM) and out.dtype == jnp.float32

    ref = reference_forward(x, conv_w, H, W)
    err = float(jnp.max(jnp.abs(out - ref)))
    if not bool(jnp.all(jnp.isfinite(out))) or err > 1e-2:
        raise RuntimeError(f"Pallas output mismatch vs pure-JAX reference (max abs err={err})")
    print("KERNEL_OK")
</pallas_src>

<mosaic_0001>
module attributes {stable_mosaic.version = 11 : i64} {
  func.func @patch_merging_kernel(%arg0: i32, %arg1: memref<128x256xf32, #tpu.memory_space<vmem>>, %arg2: memref<256x256xf32, #tpu.memory_space<vmem>>, %arg3: memref<128x256xf32, #tpu.memory_space<vmem>>) attributes {dimension_semantics = [#tpu.dimension_semantics<parallel>], iteration_bounds = array<i64: 1>, scalar_prefetch = 0 : i64, scratch_operands = 0 : i64, tpu.core_type = #tpu.core_type<tc>, window_params = [{pipeline_mode = #tpu.pipeline_mode<synchronous>, transform_indices = @transform_0, window_bounds = array<i64: 128, 256>}, {transform_indices = @transform_1, window_bounds = array<i64: 256, 256>}, {transform_indices = @transform_2, window_bounds = array<i64: 128, 256>}]} {
    %c0 = arith.constant 0 : index
    %c0_0 = arith.constant 0 : index
    %0 = vector.load %arg1[%c0, %c0_0] : memref<128x256xf32, #tpu.memory_space<vmem>>, vector<128x256xf32>
    %c0_1 = arith.constant 0 : index
    %c0_2 = arith.constant 0 : index
    %1 = vector.load %arg2[%c0_1, %c0_2] : memref<256x256xf32, #tpu.memory_space<vmem>>, vector<256x256xf32>
    %cst = arith.constant dense<0.000000e+00> : vector<128x256xf32>
    %2 = tpu.matmul %0, %1, %cst {dimension_numbers = #tpu.dot_dimension_numbers<[1], [0], [0], [1], [0, 0, 1, 1], [], []>} : vector<128x256xf32>, vector<256x256xf32>, vector<128x256xf32> -> vector<128x256xf32>
    %c0_3 = arith.constant 0 : index
    %c0_4 = arith.constant 0 : index
    %3 = vector.load %arg3[%c0_3, %c0_4] : memref<128x256xf32, #tpu.memory_space<vmem>>, vector<128x256xf32>
    tpu.vector_store %arg3[%c0_3, %c0_4], %2 {strides = array<i32>} : memref<128x256xf32, #tpu.memory_space<vmem>>, vector<128x256xf32>,
    return
  }
  func.func @transform_0(%arg0: i32) -> (i32, i32) {
    %c0_i32 = arith.constant 0 : i32
    %c0_i32_0 = arith.constant 0 : i32
    %c0_i32_1 = arith.constant 0 : i32
    return %c0_i32, %c0_i32_0 : i32, i32
  }
  func.func @transform_1(%arg0: i32) -> (i32, i32) {
    %c0_i32 = arith.constant 0 : i32
    %c0_i32_0 = arith.constant 0 : i32
    return %c0_i32, %arg0 : i32, i32
  }
  func.func @transform_2(%arg0: i32) -> (i32, i32) {
    %c0_i32 = arith.constant 0 : i32
    %c0_i32_0 = arith.constant 0 : i32
    return %c0_i32, %arg0 : i32, i32
  }
}

</mosaic_0001>

<bundles_post_ra>
// kernel: tpu_custom_call.1
= control target key start
LH: loop header
LB: loop body
LE: loop exit
PB: predicated region body
PF: predicated region fallthrough
CT: control target
= control target key end

     0   :  { %7 = vsyncpa [#allocation3], 0  ;;  %s585_s0 = inlined_call_operand.hbm [shape: f32[128,256], index: 0, kind: input, shape index: {}]   ;;  %s586_s1 = inlined_call_operand.hbm [shape: f32[256,256], index: 1, kind: input, shape index: {}]   ;;  %s587_s2 = inlined_call_operand.hbm [shape: f32[128,256], index: 2, kind: output, shape index: {}]  }
   0x1   :  { %8 = vsyncpa [#allocation6], 0 }
   0x2   :  { %9 = vsyncpa [#allocation4], 0  ;;  %s520_s9 = smov [#allocation2]   ;;  %s448_s13 = scalar_lea.hbm %s585_s0, 4096 }
   0x3   :  { %s15_s10 = sshll.u32 %s520_s9, 4  ;;  %p449_p0 = scmp.ne.s32.totalorder %s585_s0, %s448_s13  ;;  %s16_s10 = int_to_ptr.vmem [resolvable:$true] %s15_s10 }
   0x4   :  { %p452_p1 = scmp.lt.u32.totalorder %s448_s13, %s585_s0 }
   0x6   :  { %p454_p2 = pnand %p452_p1, %p449_p0 }
   0x8   :  { %457 = shalt.err (!%p454_p2)
}
   0x9   :  { %s458_s18 = scalar_lea.vmem %s16_s10, 4096  ;;  %p463_p4 = scmp.lt.s32.totalorder %s16_s10, %s16_s10 }
   0xa   :  { %p459_p3 = scmp.ne.s32.totalorder %s16_s10, %s458_s18  ;;  %p464_p5 = scmp.lt.s32.totalorder %s458_s18, %s458_s18 }
   0xc   :  { %p465_p6 = por %p464_p5, %p463_p4 }
   0xe   :  { %p466_p7 = pnand %p465_p6, %p459_p3 }
  0x10   :  { %469 = shalt.err (!%p466_p7)
}
  0x11   :  { %s521_s19 = smov 256   ;;  %s522_s20 = smov 16  }
  0x12   :  { %21 = dma.hbm_to_vmem [thread:$0]  %s585_s0, 4096, %s16_s10, [#allocation3], %s521_s19, %s521_s19, %s522_s20  }
  0x13   :  { %s523_s23 = smov [#allocation5]   ;;  %s470_s27 = scalar_lea.hbm %s586_s1, 8192 }
  0x14   :  { %s27_s24 = sshll.u32 %s523_s23, 4  ;;  %p471_p8 = scmp.ne.s32.totalorder %s586_s1, %s470_s27  ;;  %s28_s24 = int_to_ptr.vmem [resolvable:$true] %s27_s24 }
  0x15   :  { %p474_p9 = scmp.lt.u32.totalorder %s470_s27, %s586_s1 }
  0x17   :  { %p476_p10 = pnand %p474_p9, %p471_p8 }
  0x19   :  { %479 = shalt.err (!%p476_p10)
}
  0x1a   :  { %s480_s4 = scalar_lea.vmem %s28_s24, 8192  ;;  %p485_p12 = scmp.lt.s32.totalorder %s28_s24, %s28_s24 }
  0x1b   :  { %p481_p11 = scmp.ne.s32.totalorder %s28_s24, %s480_s4  ;;  %p486_p13 = scmp.lt.s32.totalorder %s480_s4, %s480_s4 }
  0x1d   :  { %p487_p0 = por %p486_p13, %p485_p12 }
  0x1f   :  { %p488_p1 = pnand %p487_p0, %p481_p11 }
  0x21   :  { %491 = shalt.err (!%p488_p1)
}
  0x22   :  { %33 = dma.hbm_to_vmem [thread:$0]  %s586_s1, 8192, %s28_s24, [#allocation6], %s521_s19, %s521_s19, %s522_s20  }
  0x23   :  { %514 = dma.done.wait [#allocation3], 4096  }
  0x24   :  { %515 = vsyncadd [#allocation3], 4294963200 }
  0x25   :  { %516 = dma.done.wait [#allocation6], 8192  }
  0x26   :  { %517 = vsyncadd [#allocation6], 4294959104  ;;  %v73_v0 = vld [vmem:[#allocation5 + $0x8] sm:$0xff]  ;;  %v75_v1 = vld [vmem:[#allocation5 + $0x18] sm:$0xff]  ;;  %s524_s1 = smov [#allocation7]  }
  0x27   :  { %v72_v2 = vld [vmem:[#allocation5] sm:$0xff]  ;;  %v347_v3 = vpack.c.bf16 %v75_v1, %v73_v0  ;;  %v74_v4 = vld [vmem:[#allocation5 + $0x10] sm:$0xff]  ;;  %v77_v5 = vld [vmem:[#allocation5 + $0x28] sm:$0xff]  ;;  %s334_s6 = sshll.u32 %s524_s1, 4  ;;  %s335_s6 = int_to_ptr.vmem [resolvable:$true] %s334_s6 }
  0x28   :  { %v79_v6 = vld [vmem:[#allocation5 + $0x38] sm:$0xff]  ;;  %v349_v7 = vpack.c.bf16 %v74_v4, %v72_v2  ;;  %v76_v9 = vld [vmem:[#allocation5 + $0x20] sm:$0xff]  ;;  %v78_v10 = vld [vmem:[#allocation5 + $0x30] sm:$0xff]  ;;  %s492_s7 = scalar_lea.vmem %s335_s6, 4096  ;;  %p497_p3 = scmp.lt.s32.totalorder %s335_s6, %s335_s6 }
  0x29   :  { %v351_v8 = vpack.c.bf16 %v79_v6, %v77_v5  ;;  %v81_v11 = vld [vmem:[#allocation5 + $0x48] sm:$0xff]  ;;  %348 = vmatprep.subr.bf16.mxu0 %v347_v3  ;;  %411 = vmatprep.subr.bf16.mxu1 %v347_v3  ;;  %v83_v12 = vld [vmem:[#allocation5 + $0x58] sm:$0xff]  ;;  %v353_v13 = vpack.c.bf16 %v78_v10, %v76_v9  ;;  %v80_v15 = vld [vmem:[#allocation5 + $0x40] sm:$0xff]  ;;  %p493_p2 = scmp.ne.s32.totalorder %s335_s6, %s492_s7  ;;  %p498_p4 = scmp.lt.s32.totalorder %s492_s7, %s492_s7 }
  0x2a   :  { %350 = vmatpush1.bf16.msra.mxu0 %v349_v7  ;;  %427 = vmatpush1.bf16.msra.mxu1 %v349_v7  ;;  %v355_v14 = vpack.c.bf16 %v83_v12, %v81_v11  ;;  %v82_v16 = vld [vmem:[#allocation5 + $0x50] sm:$0xff]  ;;  %v85_v17 = vld [vmem:[#allocation5 + $0x68] sm:$0xff]  ;;  %v87_v18 = vld [vmem:[#allocation5 + $0x78] sm:$0xff] }
  0x2b   :  { %352 = vmatprep.subr.bf16.mxu0 %v351_v8  ;;  %412 = vmatprep.subr.bf16.mxu1 %v351_v8  ;;  %v357_v19 = vpack.c.bf16 %v82_v16, %v80_v15  ;;  %v359_v20 = vpack.c.bf16 %v87_v18, %v85_v17  ;;  %v84_v21 = vld [vmem:[#allocation5 + $0x60] sm:$0xff]  ;;  %v86_v22 = vld [vmem:[#allocation5 + $0x70] sm:$0xff]  ;;  %v89_v23 = vld [vmem:[#allocation5 + $0x88] sm:$0xff]  ;;  %p499_p5 = por %p498_p4, %p497_p3 }
  0x2c   :  { %v91_v24 = vld [vmem:[#allocation5 + $0x98] sm:$0xff]  ;;  %v361_v25 = vpack.c.bf16 %v86_v22, %v84_v21  ;;  %v88_v27 = vld [vmem:[#allocation5 + $0x80] sm:$0xff]  ;;  %v90_v28 = vld [vmem:[#allocation5 + $0x90] sm:$0xff] }
  0x2d   :  { %v363_v26 = vpack.c.bf16 %v91_v24, %v89_v23  ;;  %v93_v29 = vld [vmem:[#allocation5 + $0xa8] sm:$0xff]  ;;  %v95_v30 = vld [vmem:[#allocation5 + $0xb8] sm:$0xff]  ;;  %v365_v31 = vpack.c.bf16 %v90_v28, %v88_v27  ;;  %v92_v33 = vld [vmem:[#allocation5 + $0xa0] sm:$0xff]  ;;  %p500_p6 = pnand %p499_p5, %p493_p2 }
  0x2e   :  { %354 = vmatpush1.bf16.msra.mxu0 %v353_v13  ;;  %428 = vmatpush1.bf16.msra.mxu1 %v353_v13  ;;  %v367_v32 = vpack.c.bf16 %v95_v30, %v93_v29  ;;  %v94_v34 = vld [vmem:[#allocation5 + $0xb0] sm:$0xff]  ;;  %v97_v35 = vld [vmem:[#allocation5 + $0xc8] sm:$0xff]  ;;  %v99_v36 = vld [vmem:[#allocation5 + $0xd8] sm:$0xff] }
  0x2f   :  { %356 = vmatprep.subr.bf16.mxu0 %v355_v14  ;;  %413 = vmatprep.subr.bf16.mxu1 %v355_v14  ;;  %v369_v37 = vpack.c.bf16 %v94_v34, %v92_v33  ;;  %v96_v38 = vld [vmem:[#allocation5 + $0xc0] sm:$0xff]  ;;  %v371_v39 = vpack.c.bf16 %v99_v36, %v97_v35  ;;  %v98_v40 = vld [vmem:[#allocation5 + $0xd0] sm:$0xff]  ;;  %v41_v41 = vld [vmem:[#allocation2 + $0x8] sm:$0xff] }
  0x30   :  { %v57_v42 = vld [vmem:[#allocation2 + $0x88] sm:$0xff]  ;;  %v103_v44 = vld [vmem:[#allocation5 + $0xf8] sm:$0xff]  ;;  %200 = vmatprep.mubr.f32.mxu0 %v41_v41  ;;  %v373_v45 = vpack.c.bf16 %v98_v40, %v96_v38  ;;  %v100_v47 = vld [vmem:[#allocation5 + $0xe0] sm:$0xff] }
  0x31   :  { %v101_v43 = vld [vmem:[#allocation5 + $0xe8] sm:$0xff]  ;;  %248 = vmatprep.mubr.f32.mxu1 %v57_v42  ;;  %v102_v48 = vld [vmem:[#allocation5 + $0xf0] sm:$0xff]  ;;  %v107_v50 = vld [vmem:[#allocation5 + $0x118] sm:$0xff] }
  0x32   :  { %358 = vmatpush1.bf16.msra.mxu0 %v357_v19  ;;  %429 = vmatpush1.bf16.msra.mxu1 %v357_v19  ;;  %v375_v46 = vpack.c.bf16 %v103_v44, %v101_v43  ;;  %v105_v49 = vld [vmem:[#allocation5 + $0x108] sm:$0xff]  ;;  %v377_v51 = vpack.c.bf16 %v102_v48, %v100_v47  ;;  %v104_v53 = vld [vmem:[#allocation5 + $0x100] sm:$0xff]  ;;  %v106_v54 = vld [vmem:[#allocation5 + $0x110] sm:$0xff] }
  0x33   :  { %360 = vmatprep.subr.bf16.mxu0 %v359_v20  ;;  %414 = vmatprep.subr.bf16.mxu1 %v359_v20  ;;  %v379_v52 = vpack.c.bf16 %v107_v50, %v105_v49  ;;  %v109_v55 = vld [vmem:[#allocation5 + $0x128] sm:$0xff]  ;;  %v111_v56 = vld [vmem:[#allocation5 + $0x138] sm:$0xff]  ;;  %v381_v57 = vpack.c.bf16 %v106_v54, %v104_v53  ;;  %v108_v59 = vld [vmem:[#allocation5 + $0x120] sm:$0xff] }
  0x34   :  { %v383_v58 = vpack.c.bf16 %v111_v56, %v109_v55  ;;  %v110_v60 = vld [vmem:[#allocation5 + $0x130] sm:$0xff]  ;;  %v113_v61 = vld [vmem:[#allocation5 + $0x148] sm:$0xff]  ;;  %v115_v62 = vld [vmem:[#allocation5 + $0x158] sm:$0xff] }
  0x35   :  { %v385_v63 = vpack.c.bf16 %v110_v60, %v108_v59  ;;  %v387_v0 = vpack.c.bf16 %v115_v62, %v113_v61  ;;  %v112_v1 = vld [vmem:[#allocation5 + $0x140] sm:$0xff]  ;;  %v114_v2 = vld [vmem:[#allocation5 + $0x150] sm:$0xff]  ;;  %v117_v3 = vld [vmem:[#allocation5 + $0x168] sm:$0xff] }
  0x36   :  { %362 = vmatpush1.bf16.msra.mxu0 %v361_v25  ;;  %430 = vmatpush1.bf16.msra.mxu1 %v361_v25  ;;  %v119_v4 = vld [vmem:[#allocation5 + $0x178] sm:$0xff]  ;;  %v389_v5 = vpack.c.bf16 %v114_v2, %v112_v1  ;;  %v116_v7 = vld [vmem:[#allocation5 + $0x160] sm:$0xff]  ;;  %v118_v8 = vld [vmem:[#allocation5 + $0x170] sm:$0xff] }
  0x37   :  { %364 = vmatprep.subr.bf16.mxu0 %v363_v26  ;;  %415 = vmatprep.subr.bf16.mxu1 %v363_v26  ;;  %v391_v6 = vpack.c.bf16 %v119_v4, %v117_v3  ;;  %v121_v9 = vld [vmem:[#allocation5 + $0x188] sm:$0xff]  ;;  %v123_v10 = vld [vmem:[#allocation5 + $0x198] sm:$0xff]  ;;  %v393_v11 = vpack.c.bf16 %v118_v8, %v116_v7  ;;  %v120_v13 = vld [vmem:[#allocation5 + $0x180] sm:$0xff] }
  0x38   :  { %v395_v12 = vpack.c.bf16 %v123_v10, %v121_v9  ;;  %v122_v14 = vld [vmem:[#allocation5 + $0x190] sm:$0xff]  ;;  %v125_v15 = vld [vmem:[#allocation5 + $0x1a8] sm:$0xff]  ;;  %v127_v16 = vld [vmem:[#allocation5 + $0x1b8] sm:$0xff] }
  0x39   :  { %v397_v17 = vpack.c.bf16 %v122_v14, %v120_v13  ;;  %v399_v18 = vpack.c.bf16 %v127_v16, %v125_v15  ;;  %v124_v19 = vld [vmem:[#allocation5 + $0x1a0] sm:$0xff]  ;;  %v126_v20 = vld [vmem:[#allocation5 + $0x1b0] sm:$0xff]  ;;  %v129_v21 = vld [vmem:[#allocation5 + $0x1c8] sm:$0xff] }
  0x3a   :  { %366 = vmatpush1.bf16.msra.mxu0 %v365_v31  ;;  %431 = vmatpush1.bf16.msra.mxu1 %v365_v31  ;;  %v131_v22 = vld [vmem:[#allocation5 + $0x1d8] sm:$0xff]  ;;  %v401_v23 = vpack.c.bf16 %v126_v20, %v124_v19  ;;  %v128_v25 = vld [vmem:[#allocation5 + $0x1c0] sm:$0xff]  ;;  %v130_v26 = vld [vmem:[#allocation5 + $0x1d0] sm:$0xff] }
  0x3b   :  { %368 = vmatprep.subr.bf16.mxu0 %v367_v32  ;;  %416 = vmatprep.subr.bf16.mxu1 %v367_v32  ;;  %v403_v24 = vpack.c.bf16 %v131_v22, %v129_v21  ;;  %v133_v27 = vld [vmem:[#allocation5 + $0x1e8] sm:$0xff]  ;;  %v135_v28 = vld [vmem:[#allocation5 + $0x1f8] sm:$0xff]  ;;  %v405_v29 = vpack.c.bf16 %v130_v26, %v128_v25  ;;  %v132_v31 = vld [vmem:[#allocation5 + $0x1e0] sm:$0xff] }
  0x3c   :  { %v407_v30 = vpack.c.bf16 %v135_v28, %v133_v27  ;;  %v134_v32 = vld [vmem:[#allocation5 + $0x1f0] sm:$0xff]  ;;  %v40_v34 = vld [vmem:[#allocation2] sm:$0xff]  ;;  %v43_v36 = vld [vmem:[#allocation2 + $0x18] sm:$0xff] }
  0x3d   :  { %v409_v33 = vpack.c.bf16 %v134_v32, %v132_v31  ;;  %v56_v35 = vld [vmem:[#allocation2 + $0x80] sm:$0xff]  ;;  %v42_v38 = vld [vmem:[#allocation2 + $0x10] sm:$0xff]  ;;  %v45_v40 = vld [vmem:[#allocation2 + $0x28] sm:$0xff] }
  0x3e   :  { %370 = vmatpush1.bf16.msra.mxu0 %v369_v37  ;;  %432 = vmatpush1.bf16.msra.mxu1 %v369_v37  ;;  %v59_v37 = vld [vmem:[#allocation2 + $0x98] sm:$0xff]  ;;  %v61_v41 = vld [vmem:[#allocation2 + $0xa8] sm:$0xff]  ;;  %v44_v42 = vld [vmem:[#allocation2 + $0x20] sm:$0xff] }
  0x3f   :  { %372 = vmatprep.subr.bf16.mxu0 %v371_v39  ;;  %417 = vmatprep.subr.bf16.mxu1 %v371_v39  ;;  %v58_v39 = vld [vmem:[#allocation2 + $0x90] sm:$0xff]  ;;  %v60_v43 = vld [vmem:[#allocation2 + $0xa0] sm:$0xff]  ;;  %v47_v44 = vld [vmem:[#allocation2 + $0x38] sm:$0xff] }
  0x40   :  { %v62_v47 = vld [vmem:[#allocation2 + $0xb0] sm:$0xff]  ;;  %v49_v48 = vld [vmem:[#allocation2 + $0x48] sm:$0xff]  ;;  %v48_v50 = vld [vmem:[#allocation2 + $0x40] sm:$0xff] }
  0x41   :  { %v65_v49 = vld [vmem:[#allocation2 + $0xc8] sm:$0xff]  ;;  %v67_v53 = vld [vmem:[#allocation2 + $0xd8] sm:$0xff]  ;;  %v50_v54 = vld [vmem:[#allocation2 + $0x50] sm:$0xff] }
  0x42   :  { %374 = vmatpush1.bf16.msra.mxu0 %v373_v45  ;;  %433 = vmatpush1.bf16.msra.mxu1 %v373_v45  ;;  %v63_v45 = vld [vmem:[#allocation2 + $0xb8] sm:$0xff]  ;;  %v66_v55 = vld [vmem:[#allocation2 + $0xd0] sm:$0xff]  ;;  %v53_v56 = vld [vmem:[#allocation2 + $0x68] sm:$0xff] }
  0x43   :  { %376 = vmatprep.subr.bf16.mxu0 %v375_v46  ;;  %418 = vmatprep.subr.bf16.mxu1 %v375_v46  ;;  %v46_v46 = vld [vmem:[#allocation2 + $0x30] sm:$0xff]  ;;  %v68_v59 = vld [vmem:[#allocation2 + $0xe0] sm:$0xff]  ;;  %v55_v60 = vld [vmem:[#allocation2 + $0x78] sm:$0xff] }
  0x44   :  { %v71_v61 = vld [vmem:[#allocation2 + $0xf8] sm:$0xff]  ;;  %v54_v62 = vld [vmem:[#allocation2 + $0x70] sm:$0xff] }
  0x46   :  { %378 = vmatpush1.bf16.msra.mxu0 %v377_v51  ;;  %434 = vmatpush1.bf16.msra.mxu1 %v377_v51  ;;  %v64_v51 = vld [vmem:[#allocation2 + $0xc0] sm:$0xff] }
  0x47   :  { %380 = vmatprep.subr.bf16.mxu0 %v379_v52  ;;  %419 = vmatprep.subr.bf16.mxu1 %v379_v52  ;;  %v51_v52 = vld [vmem:[#allocation2 + $0x58] sm:$0xff] }
  0x4a   :  { %382 = vmatpush1.bf16.msra.mxu0 %v381_v57  ;;  %435 = vmatpush1.bf16.msra.mxu1 %v381_v57  ;;  %v69_v57 = vld [vmem:[#allocation2 + $0xe8] sm:$0xff] }
  0x4b   :  { %384 = vmatprep.subr.bf16.mxu0 %v383_v58  ;;  %420 = vmatprep.subr.bf16.mxu1 %v383_v58  ;;  %v52_v58 = vld [vmem:[#allocation2 + $0x60] sm:$0xff] }
  0x4e   :  { %386 = vmatpush1.bf16.msra.mxu0 %v385_v63  ;;  %436 = vmatpush1.bf16.msra.mxu1 %v385_v63  ;;  %v70_v63 = vld [vmem:[#allocation2 + $0xf0] sm:$0xff] }
  0x4f   :  { %388 = vmatprep.subr.bf16.mxu0 %v387_v0  ;;  %421 = vmatprep.subr.bf16.mxu1 %v387_v0 }
  0x52   :  { %390 = vmatpush1.bf16.msra.mxu0 %v389_v5  ;;  %437 = vmatpush1.bf16.msra.mxu1 %v389_v5 }
  0x53   :  { %392 = vmatprep.subr.bf16.mxu0 %v391_v6  ;;  %422 = vmatprep.subr.bf16.mxu1 %v391_v6 }
  0x56   :  { %394 = vmatpush1.bf16.msra.mxu0 %v393_v11  ;;  %438 = vmatpush1.bf16.msra.mxu1 %v393_v11 }
  0x57   :  { %396 = vmatprep.subr.bf16.mxu0 %v395_v12  ;;  %423 = vmatprep.subr.bf16.mxu1 %v395_v12 }
  0x5a   :  { %398 = vmatpush1.bf16.msra.mxu0 %v397_v17  ;;  %439 = vmatpush1.bf16.msra.mxu1 %v397_v17 }
  0x5b   :  { %400 = vmatprep.subr.bf16.mxu0 %v399_v18  ;;  %424 = vmatprep.subr.bf16.mxu1 %v399_v18 }
  0x5e   :  { %402 = vmatpush1.bf16.msra.mxu0 %v401_v23  ;;  %440 = vmatpush1.bf16.msra.mxu1 %v401_v23 }
  0x5f   :  { %404 = vmatprep.subr.bf16.mxu0 %v403_v24  ;;  %425 = vmatprep.subr.bf16.mxu1 %v403_v24 }
  0x62   :  { %406 = vmatpush1.bf16.msra.mxu0 %v405_v29  ;;  %441 = vmatpush1.bf16.msra.mxu1 %v405_v29 }
  0x63   :  { %408 = vmatprep.subr.bf16.mxu0 %v407_v30  ;;  %426 = vmatprep.subr.bf16.mxu1 %v407_v30 }
  0x66   :  { %410 = vmatpush1.bf16.msra.mxu0 %v409_v33  ;;  %442 = vmatpush1.bf16.msra.mxu1 %v409_v33 }
  0x69   :  { %201 = vmatmul.mubr.f32.vlgmr.msra.gmra.mrb[0].mxu0 %v40_v34  ;;  %249 = vmatmul.mubr.f32.vlgmr.msra.gmra.mrb[0].mxu1 %v56_v35 }
  0x6a   :  { %206 = vmatprep.mubr.f32.mxu0 %v43_v36  ;;  %254 = vmatprep.mubr.f32.mxu1 %v59_v37 }
  0x6d   :  { %207 = vmatmul.mubr.f32.gmra.mrb[2].mxu0 %v42_v38  ;;  %255 = vmatmul.mubr.f32.gmra.mrb[2].mxu1 %v58_v39 }
  0x6e   :  { %212 = vmatprep.mubr.f32.mxu0 %v45_v40  ;;  %260 = vmatprep.mubr.f32.mxu1 %v61_v41 }
  0x71   :  { %213 = vmatmul.mubr.f32.gmra.mrb[4].mxu0 %v44_v42  ;;  %261 = vmatmul.mubr.f32.gmra.mrb[4].mxu1 %v60_v43 }
  0x72   :  { %218 = vmatprep.mubr.f32.mxu0 %v47_v44  ;;  %266 = vmatprep.mubr.f32.mxu1 %v63_v45 }
  0x75   :  { %219 = vmatmul.mubr.f32.gmra.mrb[6].mxu0 %v46_v46  ;;  %267 = vmatmul.mubr.f32.gmra.mrb[6].mxu1 %v62_v47 }
  0x76   :  { %224 = vmatprep.mubr.f32.mxu0 %v49_v48  ;;  %272 = vmatprep.mubr.f32.mxu1 %v65_v49 }
  0x79   :  { %225 = vmatmul.mubr.f32.gmra.mrb[8].mxu0 %v48_v50  ;;  %273 = vmatmul.mubr.f32.gmra.mrb[8].mxu1 %v64_v51 }
  0x7a   :  { %230 = vmatprep.mubr.f32.mxu0 %v51_v52  ;;  %278 = vmatprep.mubr.f32.mxu1 %v67_v53 }
  0x7d   :  { %231 = vmatmul.mubr.f32.gmra.mrb[10].mxu0 %v50_v54  ;;  %279 = vmatmul.mubr.f32.gmra.mrb[10].mxu1 %v66_v55 }
  0x7e   :  { %236 = vmatprep.mubr.f32.mxu0 %v53_v56  ;;  %284 = vmatprep.mubr.f32.mxu1 %v69_v57 }
  0x81   :  { %237 = vmatmul.mubr.f32.gmra.mrb[12].mxu0 %v52_v58  ;;  %285 = vmatmul.mubr.f32.gmra.mrb[12].mxu1 %v68_v59 }
  0x82   :  { %242 = vmatprep.mubr.f32.mxu0 %v55_v60  ;;  %290 = vmatprep.mubr.f32.mxu1 %v71_v61 }
  0x85   :  { %243 = vmatmul.mubr.f32.gmra.mrb[14].mxu0 %v54_v62  ;;  %291 = vmatmul.mubr.f32.gmra.mrb[14].mxu1 %v70_v63 }
 0x13c   :  { %v202_v0 = vpop.f32.mrb[0].mxu0  ;;  %v250_v1 = vpop.f32.mrb[0].mxu1 }
 0x13d   :  { %297 = vst [vmem:[#allocation7] sm:$0xff] %v202_v0  ;;  %313 = vst [vmem:[#allocation7 + $0x80] sm:$0xff] %v250_v1  ;;  %v204_v2 = vpop.f32.mrb[1].mxu0  ;;  %v252_v3 = vpop.f32.mrb[1].mxu1 }
 0x13e   :  { %298 = vst [vmem:[#allocation7 + $0x8] sm:$0xff] %v204_v2  ;;  %314 = vst [vmem:[#allocation7 + $0x88] sm:$0xff] %v252_v3 }
 0x140   :  { %v208_v4 = vpop.f32.mrb[2].mxu0  ;;  %v256_v5 = vpop.f32.mrb[2].mxu1 }
 0x141   :  { %299 = vst [vmem:[#allocation7 + $0x10] sm:$0xff] %v208_v4  ;;  %315 = vst [vmem:[#allocation7 + $0x90] sm:$0xff] %v256_v5  ;;  %v210_v6 = vpop.f32.mrb[3].mxu0  ;;  %v258_v7 = vpop.f32.mrb[3].mxu1 }
 0x142   :  { %300 = vst [vmem:[#allocation7 + $0x18] sm:$0xff] %v210_v6  ;;  %316 = vst [vmem:[#allocation7 + $0x98] sm:$0xff] %v258_v7 }
 0x144   :  { %v214_v8 = vpop.f32.mrb[4].mxu0  ;;  %v262_v9 = vpop.f32.mrb[4].mxu1 }
 0x145   :  { %301 = vst [vmem:[#allocation7 + $0x20] sm:$0xff] %v214_v8  ;;  %317 = vst [vmem:[#allocation7 + $0xa0] sm:$0xff] %v262_v9  ;;  %v216_v10 = vpop.f32.mrb[5].mxu0  ;;  %v264_v11 = vpop.f32.mrb[5].mxu1 }
 0x146   :  { %302 = vst [vmem:[#allocation7 + $0x28] sm:$0xff] %v216_v10  ;;  %318 = vst [vmem:[#allocation7 + $0xa8] sm:$0xff] %v264_v11 }
 0x148   :  { %v220_v12 = vpop.f32.mrb[6].mxu0  ;;  %v268_v13 = vpop.f32.mrb[6].mxu1 }
 0x149   :  { %303 = vst [vmem:[#allocation7 + $0x30] sm:$0xff] %v220_v12  ;;  %319 = vst [vmem:[#allocation7 + $0xb0] sm:$0xff] %v268_v13  ;;  %v222_v14 = vpop.f32.mrb[7].mxu0  ;;  %v270_v15 = vpop.f32.mrb[7].mxu1 }
 0x14a   :  { %304 = vst [vmem:[#allocation7 + $0x38] sm:$0xff] %v222_v14  ;;  %320 = vst [vmem:[#allocation7 + $0xb8] sm:$0xff] %v270_v15 }
 0x14c   :  { %v226_v16 = vpop.f32.mrb[8].mxu0  ;;  %v274_v17 = vpop.f32.mrb[8].mxu1 }
 0x14d   :  { %305 = vst [vmem:[#allocation7 + $0x40] sm:$0xff] %v226_v16  ;;  %321 = vst [vmem:[#allocation7 + $0xc0] sm:$0xff] %v274_v17  ;;  %v228_v18 = vpop.f32.mrb[9].mxu0  ;;  %v276_v19 = vpop.f32.mrb[9].mxu1 }
 0x14e   :  { %306 = vst [vmem:[#allocation7 + $0x48] sm:$0xff] %v228_v18  ;;  %322 = vst [vmem:[#allocation7 + $0xc8] sm:$0xff] %v276_v19 }
 0x150   :  { %v232_v20 = vpop.f32.mrb[10].mxu0  ;;  %v280_v21 = vpop.f32.mrb[10].mxu1 }
 0x151   :  { %307 = vst [vmem:[#allocation7 + $0x50] sm:$0xff] %v232_v20  ;;  %323 = vst [vmem:[#allocation7 + $0xd0] sm:$0xff] %v280_v21  ;;  %v234_v22 = vpop.f32.mrb[11].mxu0  ;;  %v282_v23 = vpop.f32.mrb[11].mxu1 }
 0x152   :  { %308 = vst [vmem:[#allocation7 + $0x58] sm:$0xff] %v234_v22  ;;  %324 = vst [vmem:[#allocation7 + $0xd8] sm:$0xff] %v282_v23 }
 0x154   :  { %v238_v24 = vpop.f32.mrb[12].mxu0  ;;  %v286_v25 = vpop.f32.mrb[12].mxu1 }
 0x155   :  { %309 = vst [vmem:[#allocation7 + $0x60] sm:$0xff] %v238_v24  ;;  %325 = vst [vmem:[#allocation7 + $0xe0] sm:$0xff] %v286_v25  ;;  %v240_v26 = vpop.f32.mrb[13].mxu0  ;;  %v288_v27 = vpop.f32.mrb[13].mxu1 }
 0x156   :  { %310 = vst [vmem:[#allocation7 + $0x68] sm:$0xff] %v240_v26  ;;  %326 = vst [vmem:[#allocation7 + $0xe8] sm:$0xff] %v288_v27 }
 0x158   :  { %v244_v28 = vpop.f32.mrb[14].mxu0  ;;  %v292_v29 = vpop.f32.mrb[14].mxu1 }
 0x159   :  { %311 = vst [vmem:[#allocation7 + $0x70] sm:$0xff] %v244_v28  ;;  %327 = vst [vmem:[#allocation7 + $0xf0] sm:$0xff] %v292_v29  ;;  %v246_v30 = vpop.f32.mrb[15].mxu0  ;;  %v294_v31 = vpop.f32.mrb[15].mxu1 }
 0x15a   :  { %312 = vst [vmem:[#allocation7 + $0x78] sm:$0xff] %v246_v30  ;;  %328 = vst [vmem:[#allocation7 + $0xf8] sm:$0xff] %v294_v31 }
 0x15b   :  { %503 = shalt.err (!%p500_p6)
}
 0x15c   :  { %s504_s10 = scalar_lea.hbm %s587_s2, 4096 }
 0x15d   :  { %p505_p7 = scmp.ne.s32.totalorder %s587_s2, %s504_s10  ;;  %p508_p8 = scmp.lt.u32.totalorder %s504_s10, %s587_s2 }
 0x15f   :  { %p510_p9 = pnand %p508_p8, %p505_p7 }
 0x161   :  { %513 = shalt.err (!%p510_p9)
}
 0x162   :  { %340 = dma.vmem_to_hbm [thread:$0]  %s335_s6, 4096, %s587_s2, [#allocation4], %s521_s19, %s521_s19, %s522_s20  }
 0x163   :  { %518 = dma.done.wait [#allocation4], 4096  }
 0x164   :  { %519 = vsyncadd [#allocation4], 4294963200 }
 0x165   :  { %344 = vsyncpa [#allocation3], 1 }
 0x166   :  { %345 = vsyncpa [#allocation6], 1 }
 0x167   :  { %346 = vsyncpa [#allocation4], 1 }

</bundles_post_ra>
